<compile_context>
chip_gen: v6e
topology: v6e:2x2x1
jax: 0.10.0
libtpu: 0.0.40
codegen_flags: <defaults>
</compile_context>

<pallas_src>
import functools

import jax
import jax.numpy as jnp
from jax import lax
from jax.experimental import pallas as pl
from jax.experimental.pallas import tpu as pltpu


def _round_up(n, m):
    return ((n + m - 1) // m) * m


# -----------------------------------------------------------------------------
# Fused kernel: input projection -> LSTM recurrence -> FC + log_softmax.
# Ref order: inputs..., outputs..., scratch...
# -----------------------------------------------------------------------------
def _actor_fused_kernel(x2d_ref, wih_t_ref, b_ref, h0_ref, c0_ref,
                        whh_t_ref, wfc_t_ref, bfc_ref,
                        y_ref, hn_ref, cn_ref,
                        xproj_ref, hs_ref):
    f32 = jnp.float32
    Bp, H = h0_ref.shape                       # padded batch, hidden size
    S = x2d_ref.shape[0] // Bp                 # sequence length

    # ---- Phase A: batched input projection (one big matmul, off the critical
    #      path of the recurrence).  Result stays in VMEM scratch. -------------
    wih = wih_t_ref[...]                       # (I, Gp)
    x2 = x2d_ref[...].astype(wih.dtype)        # (S*Bp, I)
    xproj_ref[...] = (jnp.dot(x2, wih, preferred_element_type=f32)
                      + b_ref[...])            # f32 (S*Bp, Gp)

    # ---- Phase B: sequential recurrence.  Only h_prev @ W_hh^T is on the
    #      critical path.  W_hh is tiny in the packed-gate layout (H, 4H), so
    #      hoisting it above the unrolled loop is spill-free. ------------------
    whh = whh_t_ref[...]                       # (H, Gp)
    mm_dtype = whh.dtype

    def step(t, carry):
        h, c = carry
        row0 = t * Bp
        if not isinstance(row0, int):          # dynamic index (fori_loop path)
            row0 = pl.multiple_of(row0, Bp)
        gates = xproj_ref[pl.ds(row0, Bp), :] + jnp.dot(
            h.astype(mm_dtype), whh, preferred_element_type=f32)   # (Bp, Gp)
        # Packed gates: one sigmoid pass + one tanh pass over the whole slab
        # (instead of 4 per-gate passes over 75%-padded vregs), then slice.
        sig = jax.nn.sigmoid(gates)            # f32 gate math (v5e-safe)
        tnh = jnp.tanh(gates)
        i_g = sig[:, 0 * H:1 * H]
        f_g = sig[:, 1 * H:2 * H]
        g_g = tnh[:, 2 * H:3 * H]
        o_g = sig[:, 3 * H:4 * H]
        c_new = f_g * c + i_g * g_g            # carry stays f32
        h_new = o_g * jnp.tanh(c_new)
        hs_ref[pl.ds(row0, Bp), :] = h_new     # per-step hidden into scratch
        return (h_new, c_new)

    carry = (h0_ref[...], c0_ref[...])
    if S <= 16:
        # Short sequence: full static unroll (max LLO scheduling visibility).
        for t in range(S):
            carry = step(t, carry)
    else:
        # Longer sequences: bounded trace, modest unroll to avoid spills.
        carry = lax.fori_loop(0, S, step, carry, unroll=4)
    h_fin, c_fin = carry

    # Final state written once (not every step).
    hn_ref[...] = h_fin
    cn_ref[...] = c_fin

    # ---- Phase C: batched FC + log_softmax over all S*Bp rows (lane-dense
    #      Op-wide output; padded logit columns carry -1e30 bias). ------------
    wfc = wfc_t_ref[...]                       # (H, Op)
    hcat = hs_ref[...].astype(wfc.dtype)       # (S*Bp, H)
    logits = (jnp.dot(hcat, wfc, preferred_element_type=f32)
              + bfc_ref[...])                  # f32; pad cols ~ -1e30
    m = jnp.max(logits, axis=-1, keepdims=True)
    lse = jnp.log(jnp.sum(jnp.exp(logits - m), axis=-1, keepdims=True)) + m
    y_ref[...] = logits - lse


# -----------------------------------------------------------------------------
# One-time parameter preparation (hoisted out of the per-call forward).
# -----------------------------------------------------------------------------
def prepare_params(params, *, matmul_dtype=jnp.bfloat16):
    """Re-layout PyTorch-shaped LSTM/FC weights into the TPU-friendly layout.

    Packed-gate layout: gate axis is contiguous (4H), padded to a multiple of
    128 lanes.  MXU operands optionally cast to bf16 (f32 accumulation in the
    kernel); biases stay f32.
    """
    f32 = jnp.float32
    w_ih, w_hh = params["w_ih"], params["w_hh"]
    b_ih, b_hh = params["b_ih"], params["b_hh"]
    w_fc, b_fc = params["w_fc"], params["b_fc"]

    H = w_hh.shape[1]
    O = w_fc.shape[0]
    G = 4 * H
    Gp = _round_up(G, 128)
    Op = _round_up(O, 128)

    wih_t = jnp.pad(w_ih.T.astype(f32), ((0, 0), (0, Gp - G))).astype(matmul_dtype)
    whh_t = jnp.pad(w_hh.T.astype(f32), ((0, 0), (0, Gp - G))).astype(matmul_dtype)
    b = jnp.pad((b_ih + b_hh).astype(f32), (0, Gp - G)).reshape(1, Gp)
    wfc_t = jnp.pad(w_fc.T.astype(f32), ((0, 0), (0, Op - O))).astype(matmul_dtype)
    # Padded logit columns get -1e30 (kept in f32!) so they drop out of the
    # log_softmax normalizer.
    bfc = jnp.full((Op,), -1e30, f32).at[:O].set(b_fc.astype(f32)).reshape(1, Op)
    return {"wih_t": wih_t, "whh_t": whh_t, "b": b, "wfc_t": wfc_t, "bfc": bfc}


# -----------------------------------------------------------------------------
# Forward wrapper.
# -----------------------------------------------------------------------------
def actor_network_forward(x, hidden, prep, *, out_size):
    """x: (B, S, I) f32; hidden = (h0, c0), each (1, B, H); prep from prepare_params.

    Returns (log_probs (B, S, out_size), (h_n, c_n) each (1, B, H)), matching
    PyTorch ActorNetwork.forward (batch_first LSTM -> fc -> log_softmax(dim=2)).
    """
    f32 = jnp.float32
    wih_t, whh_t = prep["wih_t"], prep["whh_t"]
    b, wfc_t, bfc = prep["b"], prep["wfc_t"], prep["bfc"]

    B, S, I = x.shape
    H = hidden[0].shape[-1]
    Gp = wih_t.shape[1]
    Op = wfc_t.shape[1]
    O = out_size
    Bp = _round_up(B, 8)

    # Activation layout: time-major, batch padded to 8 sublanes, f32.
    x_tm = jnp.transpose(x, (1, 0, 2)).astype(f32)          # (S, B, I)
    x_tm = jnp.pad(x_tm, ((0, 0), (0, Bp - B), (0, 0)))      # (S, Bp, I)
    x2d = x_tm.reshape(S * Bp, I)
    h0 = jnp.pad(hidden[0][0].astype(f32), ((0, Bp - B), (0, 0)))
    c0 = jnp.pad(hidden[1][0].astype(f32), ((0, Bp - B), (0, 0)))

    # Explicit scoped-VMEM budget sized from the actual footprint (x2 for the
    # pipeline's double buffering), clamped to the smallest default scoped
    # limit so it is safe on v5e/v6e/v7x.
    wbytes = jnp.dtype(wih_t.dtype).itemsize
    io_bytes = ((S * Bp * I + 2 * Bp * H                     # x2d, h0, c0
                 + Gp + Op                                   # biases
                 + S * Bp * Op + 2 * Bp * H) * 4             # outputs
                + (I * Gp + H * Gp + H * Op) * wbytes)       # weights
    scratch_bytes = (S * Bp * Gp + S * Bp * H) * 4           # xproj + hs
    vmem_limit = int(max(4 << 20,
                         min(2 * io_bytes + scratch_bytes + (1 << 20), 32 << 20)))

    y2d, h_n, c_n = pl.pallas_call(
        _actor_fused_kernel,
        out_shape=(
            jax.ShapeDtypeStruct((S * Bp, Op), f32),
            jax.ShapeDtypeStruct((Bp, H), f32),
            jax.ShapeDtypeStruct((Bp, H), f32),
        ),
        grid=(1,),
        in_specs=[
            pl.BlockSpec((S * Bp, I), lambda i: (0, 0)),     # x2d
            pl.BlockSpec((I, Gp), lambda i: (0, 0)),         # W_ih^T (packed)
            pl.BlockSpec((1, Gp), lambda i: (0, 0)),         # b_ih + b_hh
            pl.BlockSpec((Bp, H), lambda i: (0, 0)),         # h0
            pl.BlockSpec((Bp, H), lambda i: (0, 0)),         # c0
            pl.BlockSpec((H, Gp), lambda i: (0, 0)),         # W_hh^T (packed)
            pl.BlockSpec((H, Op), lambda i: (0, 0)),         # W_fc^T
            pl.BlockSpec((1, Op), lambda i: (0, 0)),         # fc bias (+ -1e30 pad)
        ],
        out_specs=(
            pl.BlockSpec((S * Bp, Op), lambda i: (0, 0)),    # log_probs (lane-dense)
            pl.BlockSpec((Bp, H), lambda i: (0, 0)),         # h_n
            pl.BlockSpec((Bp, H), lambda i: (0, 0)),         # c_n
        ),
        scratch_shapes=[
            pltpu.VMEM((S * Bp, Gp), f32),                   # xproj (never hits HBM)
            pltpu.VMEM((S * Bp, H), f32),                    # hs slab (never hits HBM)
        ],
        compiler_params=pltpu.CompilerParams(
            dimension_semantics=("arbitrary",),
            vmem_limit_bytes=vmem_limit),
    )(x2d, wih_t, b, h0, c0, whh_t, wfc_t, bfc)

    # Crop padding, restore batch_first layout, restore (1, B, H) state shape.
    log_probs = jnp.transpose(y2d.reshape(S, Bp, Op)[:, :B, :O], (1, 0, 2))
    return log_probs, (h_n[:B][None], c_n[:B][None])


def init_params(key, in_size, hidden_size, out_size):
    """Deterministic synthetic parameters with PyTorch-compatible shapes."""
    ks = jax.random.split(key, 6)
    k_lstm = 1.0 / jnp.sqrt(hidden_size)
    k_fc = 1.0 / jnp.sqrt(hidden_size)
    u = lambda k, shape, s: jax.random.uniform(k, shape, jnp.float32, -s, s)
    return {
        "w_ih": u(ks[0], (4 * hidden_size, in_size), k_lstm),
        "w_hh": u(ks[1], (4 * hidden_size, hidden_size), k_lstm),
        "b_ih": u(ks[2], (4 * hidden_size,), k_lstm),
        "b_hh": u(ks[3], (4 * hidden_size,), k_lstm),
        "w_fc": u(ks[4], (out_size, hidden_size), k_fc),
        "b_fc": u(ks[5], (out_size,), k_fc),
    }


def _reference_forward(x, hidden, params):
    """Pure-JAX reference of the PyTorch forward (sanity check)."""
    w_ih, w_hh = params["w_ih"], params["w_hh"]
    b = params["b_ih"] + params["b_hh"]
    w_fc, b_fc = params["w_fc"], params["b_fc"]
    H = w_hh.shape[1]
    h, c = hidden[0][0], hidden[1][0]

    def step(carry, x_t):
        h, c = carry
        g = x_t @ w_ih.T + h @ w_hh.T + b
        i = jax.nn.sigmoid(g[:, :H])
        f = jax.nn.sigmoid(g[:, H:2 * H])
        gg = jnp.tanh(g[:, 2 * H:3 * H])
        o = jax.nn.sigmoid(g[:, 3 * H:])
        c = f * c + i * gg
        h = o * jnp.tanh(c)
        return (h, c), h

    (h_n, c_n), hs = jax.lax.scan(step, (h, c), jnp.transpose(x, (1, 0, 2)))
    hs = jnp.transpose(hs, (1, 0, 2))
    logits = hs @ w_fc.T + b_fc
    return jax.nn.log_softmax(logits, axis=2), (h_n[None], c_n[None])


if __name__ == "__main__":
    B, S, I, H, O = 2, 8, 16, 32, 4

    key = jax.random.PRNGKey(0)
    kx, kh, kc, kp = jax.random.split(key, 4)
    x = jax.random.normal(kx, (B, S, I), jnp.float32)
    h0 = jax.random.normal(kh, (1, B, H), jnp.float32) * 0.1
    c0 = jax.random.normal(kc, (1, B, H), jnp.float32) * 0.1
    params = init_params(kp, I, H, O)

    ref_lp, (ref_h, ref_c) = _reference_forward(x, (h0, c0), params)

    fwd = jax.jit(functools.partial(actor_network_forward, out_size=O))

    # f32 matmul path: strict check against the pure-JAX / PyTorch semantics.
    prep_f32 = prepare_params(params, matmul_dtype=jnp.float32)
    lp32, (hn32, cn32) = fwd(x, (h0, c0), prep_f32)
    jax.block_until_ready((lp32, hn32, cn32))
    assert lp32.shape == (B, S, O)
    assert hn32.shape == (1, B, H) and cn32.shape == (1, B, H)
    assert jnp.allclose(lp32, ref_lp, atol=1e-5), "f32 log_probs mismatch"
    assert jnp.allclose(hn32, ref_h, atol=1e-5), "f32 h_n mismatch"
    assert jnp.allclose(cn32, ref_c, atol=1e-5), "f32 c_n mismatch"

    # Default path (bf16 MXU operands, f32 accumulation + gate math): loose
    # check — recurrence error compounds over S, so exact 1e-5 is not expected.
    prep_bf16 = prepare_params(params)  # matmul_dtype=jnp.bfloat16
    lp16, (hn16, cn16) = fwd(x, (h0, c0), prep_bf16)
    jax.block_until_ready((lp16, hn16, cn16))
    assert lp16.shape == (B, S, O)
    assert bool(jnp.all(jnp.isfinite(lp16)))
    assert float(jnp.max(jnp.abs(lp16 - ref_lp))) < 0.3, "bf16 log_probs drifted"
    assert jnp.allclose(jnp.sum(jnp.exp(lp16), axis=-1), 1.0, atol=1e-3)

    print("KERNEL_OK")
</pallas_src>

<mosaic_0001>
module attributes {stable_mosaic.version = 11 : i64} {
  func.func @_actor_fused_kernel(%arg0: i32, %arg1: memref<64x16xf32, #tpu.memory_space<vmem>>, %arg2: memref<16x128xf32, #tpu.memory_space<vmem>>, %arg3: memref<1x128xf32, #tpu.memory_space<vmem>>, %arg4: memref<8x32xf32, #tpu.memory_space<vmem>>, %arg5: memref<8x32xf32, #tpu.memory_space<vmem>>, %arg6: memref<32x128xf32, #tpu.memory_space<vmem>>, %arg7: memref<32x128xf32, #tpu.memory_space<vmem>>, %arg8: memref<1x128xf32, #tpu.memory_space<vmem>>, %arg9: memref<64x128xf32, #tpu.memory_space<vmem>>, %arg10: memref<8x32xf32, #tpu.memory_space<vmem>>, %arg11: memref<8x32xf32, #tpu.memory_space<vmem>>, %arg12: memref<64x128xf32, #tpu.memory_space<vmem>>, %arg13: memref<64x32xf32, #tpu.memory_space<vmem>>) attributes {dimension_semantics = [#tpu.dimension_semantics<arbitrary>], iteration_bounds = array<i64: 1>, scalar_prefetch = 0 : i64, scratch_operands = 2 : i64, tpu.core_type = #tpu.core_type<tc>, window_params = [{pipeline_mode = #tpu.pipeline_mode<synchronous>, transform_indices = @transform_0, window_bounds = array<i64: 64, 16>}, {pipeline_mode = #tpu.pipeline_mode<synchronous>, transform_indices = @transform_1, window_bounds = array<i64: 16, 128>}, {pipeline_mode = #tpu.pipeline_mode<synchronous>, transform_indices = @transform_2, window_bounds = array<i64: 1, 128>}, {pipeline_mode = #tpu.pipeline_mode<synchronous>, transform_indices = @transform_3, window_bounds = array<i64: 8, 32>}, {pipeline_mode = #tpu.pipeline_mode<synchronous>, transform_indices = @transform_4, window_bounds = array<i64: 8, 32>}, {pipeline_mode = #tpu.pipeline_mode<synchronous>, transform_indices = @transform_5, window_bounds = array<i64: 32, 128>}, {pipeline_mode = #tpu.pipeline_mode<synchronous>, transform_indices = @transform_6, window_bounds = array<i64: 32, 128>}, {pipeline_mode = #tpu.pipeline_mode<synchronous>, transform_indices = @transform_7, window_bounds = array<i64: 1, 128>}, {pipeline_mode = #tpu.pipeline_mode<synchronous>, transform_indices = @transform_8, window_bounds = array<i64: 64, 128>}, {pipeline_mode = #tpu.pipeline_mode<synchronous>, transform_indices = @transform_9, window_bounds = array<i64: 8, 32>}, {pipeline_mode = #tpu.pipeline_mode<synchronous>, transform_indices = @transform_10, window_bounds = array<i64: 8, 32>}]} {
    %c0 = arith.constant 0 : index
    %c0_0 = arith.constant 0 : index
    %0 = vector.load %arg2[%c0, %c0_0] : memref<16x128xf32, #tpu.memory_space<vmem>>, vector<16x128xf32>
    %c0_1 = arith.constant 0 : index
    %c0_2 = arith.constant 0 : index
    %1 = vector.load %arg1[%c0_1, %c0_2] : memref<64x16xf32, #tpu.memory_space<vmem>>, vector<64x16xf32>
    %cst = arith.constant dense<0.000000e+00> : vector<64x128xf32>
    %2 = tpu.matmul %1, %0, %cst {dimension_numbers = #tpu.dot_dimension_numbers<[1], [0], [0], [1], [0, 0, 1, 1], [], []>} : vector<64x16xf32>, vector<16x128xf32>, vector<64x128xf32> -> vector<64x128xf32>
    %c0_3 = arith.constant 0 : index
    %c0_4 = arith.constant 0 : index
    %3 = vector.load %arg3[%c0_3, %c0_4] : memref<1x128xf32, #tpu.memory_space<vmem>>, vector<1x128xf32>
    %4 = vector.broadcast %3 : vector<1x128xf32> to vector<64x128xf32>
    %5 = arith.addf %2, %4 : vector<64x128xf32>
    %c0_5 = arith.constant 0 : index
    %c0_6 = arith.constant 0 : index
    %6 = vector.load %arg12[%c0_5, %c0_6] : memref<64x128xf32, #tpu.memory_space<vmem>>, vector<64x128xf32>
    tpu.vector_store %arg12[%c0_5, %c0_6], %5 {strides = array<i32>} : memref<64x128xf32, #tpu.memory_space<vmem>>, vector<64x128xf32>,
    %c0_7 = arith.constant 0 : index
    %c0_8 = arith.constant 0 : index
    %7 = vector.load %arg6[%c0_7, %c0_8] : memref<32x128xf32, #tpu.memory_space<vmem>>, vector<32x128xf32>
    %c0_9 = arith.constant 0 : index
    %c0_10 = arith.constant 0 : index
    %8 = vector.load %arg4[%c0_9, %c0_10] : memref<8x32xf32, #tpu.memory_space<vmem>>, vector<8x32xf32>
    %c0_11 = arith.constant 0 : index
    %c0_12 = arith.constant 0 : index
    %9 = vector.load %arg5[%c0_11, %c0_12] : memref<8x32xf32, #tpu.memory_space<vmem>>, vector<8x32xf32>
    %c0_13 = arith.constant 0 : index
    %c0_14 = arith.constant 0 : index
    %10 = vector.load %arg12[%c0_13, %c0_14] : memref<64x128xf32, #tpu.memory_space<vmem>>, vector<8x128xf32>
    %cst_15 = arith.constant dense<0.000000e+00> : vector<8x128xf32>
    %11 = tpu.matmul %8, %7, %cst_15 {dimension_numbers = #tpu.dot_dimension_numbers<[1], [0], [0], [1], [0, 0, 1, 1], [], []>} : vector<8x32xf32>, vector<32x128xf32>, vector<8x128xf32> -> vector<8x128xf32>
    %12 = arith.addf %10, %11 : vector<8x128xf32>
    %13 = arith.negf %12 : vector<8x128xf32>
    %14 = math.exp %13 : vector<8x128xf32>
    %cst_16 = arith.constant 1.000000e+00 : f32
    %15 = vector.broadcast %cst_16 : f32 to vector<8x128xf32>
    %16 = arith.addf %15, %14 : vector<8x128xf32>
    %17 = arith.divf %15, %16 : vector<8x128xf32>
    %18 = math.tanh %12 : vector<8x128xf32>
    %19 = vector.extract_strided_slice %17 {offsets = [0, 0], sizes = [8, 32], strides = [1, 1]} : vector<8x128xf32> to vector<8x32xf32>
    %20 = vector.extract_strided_slice %17 {offsets = [0, 32], sizes = [8, 32], strides = [1, 1]} : vector<8x128xf32> to vector<8x32xf32>
    %21 = vector.extract_strided_slice %18 {offsets = [0, 64], sizes = [8, 32], strides = [1, 1]} : vector<8x128xf32> to vector<8x32xf32>
    %22 = vector.extract_strided_slice %17 {offsets = [0, 96], sizes = [8, 32], strides = [1, 1]} : vector<8x128xf32> to vector<8x32xf32>
    %23 = arith.mulf %20, %9 : vector<8x32xf32>
    %24 = arith.mulf %19, %21 : vector<8x32xf32>
    %25 = arith.addf %23, %24 : vector<8x32xf32>
    %26 = math.tanh %25 : vector<8x32xf32>
    %27 = arith.mulf %22, %26 : vector<8x32xf32>
    %c0_17 = arith.constant 0 : index
    %c0_18 = arith.constant 0 : index
    %28 = vector.load %arg13[%c0_17, %c0_18] : memref<64x32xf32, #tpu.memory_space<vmem>>, vector<8x32xf32>
    tpu.vector_store %arg13[%c0_17, %c0_18], %27 {strides = array<i32>} : memref<64x32xf32, #tpu.memory_space<vmem>>, vector<8x32xf32>,
    %c8 = arith.constant 8 : index
    %c0_19 = arith.constant 0 : index
    %29 = vector.load %arg12[%c8, %c0_19] : memref<64x128xf32, #tpu.memory_space<vmem>>, vector<8x128xf32>
    %cst_20 = arith.constant dense<0.000000e+00> : vector<8x128xf32>
    %30 = tpu.matmul %27, %7, %cst_20 {dimension_numbers = #tpu.dot_dimension_numbers<[1], [0], [0], [1], [0, 0, 1, 1], [], []>} : vector<8x32xf32>, vector<32x128xf32>, vector<8x128xf32> -> vector<8x128xf32>
    %31 = arith.addf %29, %30 : vector<8x128xf32>
    %32 = arith.negf %31 : vector<8x128xf32>
    %33 = math.exp %32 : vector<8x128xf32>
    %cst_21 = arith.constant 1.000000e+00 : f32
    %34 = vector.broadcast %cst_21 : f32 to vector<8x128xf32>
    %35 = arith.addf %34, %33 : vector<8x128xf32>
    %36 = arith.divf %34, %35 : vector<8x128xf32>
    %37 = math.tanh %31 : vector<8x128xf32>
    %38 = vector.extract_strided_slice %36 {offsets = [0, 0], sizes = [8, 32], strides = [1, 1]} : vector<8x128xf32> to vector<8x32xf32>
    %39 = vector.extract_strided_slice %36 {offsets = [0, 32], sizes = [8, 32], strides = [1, 1]} : vector<8x128xf32> to vector<8x32xf32>
    %40 = vector.extract_strided_slice %37 {offsets = [0, 64], sizes = [8, 32], strides = [1, 1]} : vector<8x128xf32> to vector<8x32xf32>
    %41 = vector.extract_strided_slice %36 {offsets = [0, 96], sizes = [8, 32], strides = [1, 1]} : vector<8x128xf32> to vector<8x32xf32>
    %42 = arith.mulf %39, %25 : vector<8x32xf32>
    %43 = arith.mulf %38, %40 : vector<8x32xf32>
    %44 = arith.addf %42, %43 : vector<8x32xf32>
    %45 = math.tanh %44 : vector<8x32xf32>
    %46 = arith.mulf %41, %45 : vector<8x32xf32>
    %c8_22 = arith.constant 8 : index
    %c0_23 = arith.constant 0 : index
    %47 = vector.load %arg13[%c8_22, %c0_23] : memref<64x32xf32, #tpu.memory_space<vmem>>, vector<8x32xf32>
    tpu.vector_store %arg13[%c8_22, %c0_23], %46 {strides = array<i32>} : memref<64x32xf32, #tpu.memory_space<vmem>>, vector<8x32xf32>,
    %c16 = arith.constant 16 : index
    %c0_24 = arith.constant 0 : index
    %48 = vector.load %arg12[%c16, %c0_24] : memref<64x128xf32, #tpu.memory_space<vmem>>, vector<8x128xf32>
    %cst_25 = arith.constant dense<0.000000e+00> : vector<8x128xf32>
    %49 = tpu.matmul %46, %7, %cst_25 {dimension_numbers = #tpu.dot_dimension_numbers<[1], [0], [0], [1], [0, 0, 1, 1], [], []>} : vector<8x32xf32>, vector<32x128xf32>, vector<8x128xf32> -> vector<8x128xf32>
    %50 = arith.addf %48, %49 : vector<8x128xf32>
    %51 = arith.negf %50 : vector<8x128xf32>
    %52 = math.exp %51 : vector<8x128xf32>
    %cst_26 = arith.constant 1.000000e+00 : f32
    %53 = vector.broadcast %cst_26 : f32 to vector<8x128xf32>
    %54 = arith.addf %53, %52 : vector<8x128xf32>
    %55 = arith.divf %53, %54 : vector<8x128xf32>
    %56 = math.tanh %50 : vector<8x128xf32>
    %57 = vector.extract_strided_slice %55 {offsets = [0, 0], sizes = [8, 32], strides = [1, 1]} : vector<8x128xf32> to vector<8x32xf32>
    %58 = vector.extract_strided_slice %55 {offsets = [0, 32], sizes = [8, 32], strides = [1, 1]} : vector<8x128xf32> to vector<8x32xf32>
    %59 = vector.extract_strided_slice %56 {offsets = [0, 64], sizes = [8, 32], strides = [1, 1]} : vector<8x128xf32> to vector<8x32xf32>
    %60 = vector.extract_strided_slice %55 {offsets = [0, 96], sizes = [8, 32], strides = [1, 1]} : vector<8x128xf32> to vector<8x32xf32>
    %61 = arith.mulf %58, %44 : vector<8x32xf32>
    %62 = arith.mulf %57, %59 : vector<8x32xf32>
    %63 = arith.addf %61, %62 : vector<8x32xf32>
    %64 = math.tanh %63 : vector<8x32xf32>
    %65 = arith.mulf %60, %64 : vector<8x32xf32>
    %c16_27 = arith.constant 16 : index
    %c0_28 = arith.constant 0 : index
    %66 = vector.load %arg13[%c16_27, %c0_28] : memref<64x32xf32, #tpu.memory_space<vmem>>, vector<8x32xf32>
    tpu.vector_store %arg13[%c16_27, %c0_28], %65 {strides = array<i32>} : memref<64x32xf32, #tpu.memory_space<vmem>>, vector<8x32xf32>,
    %c24 = arith.constant 24 : index
    %c0_29 = arith.constant 0 : index
    %67 = vector.load %arg12[%c24, %c0_29] : memref<64x128xf32, #tpu.memory_space<vmem>>, vector<8x128xf32>
    %cst_30 = arith.constant dense<0.000000e+00> : vector<8x128xf32>
    %68 = tpu.matmul %65, %7, %cst_30 {dimension_numbers = #tpu.dot_dimension_numbers<[1], [0], [0], [1], [0, 0, 1, 1], [], []>} : vector<8x32xf32>, vector<32x128xf32>, vector<8x128xf32> -> vector<8x128xf32>
    %69 = arith.addf %67, %68 : vector<8x128xf32>
    %70 = arith.negf %69 : vector<8x128xf32>
    %71 = math.exp %70 : vector<8x128xf32>
    %cst_31 = arith.constant 1.000000e+00 : f32
    %72 = vector.broadcast %cst_31 : f32 to vector<8x128xf32>
    %73 = arith.addf %72, %71 : vector<8x128xf32>
    %74 = arith.divf %72, %73 : vector<8x128xf32>
    %75 = math.tanh %69 : vector<8x128xf32>
    %76 = vector.extract_strided_slice %74 {offsets = [0, 0], sizes = [8, 32], strides = [1, 1]} : vector<8x128xf32> to vector<8x32xf32>
    %77 = vector.extract_strided_slice %74 {offsets = [0, 32], sizes = [8, 32], strides = [1, 1]} : vector<8x128xf32> to vector<8x32xf32>
    %78 = vector.extract_strided_slice %75 {offsets = [0, 64], sizes = [8, 32], strides = [1, 1]} : vector<8x128xf32> to vector<8x32xf32>
    %79 = vector.extract_strided_slice %74 {offsets = [0, 96], sizes = [8, 32], strides = [1, 1]} : vector<8x128xf32> to vector<8x32xf32>
    %80 = arith.mulf %77, %63 : vector<8x32xf32>
    %81 = arith.mulf %76, %78 : vector<8x32xf32>
    %82 = arith.addf %80, %81 : vector<8x32xf32>
    %83 = math.tanh %82 : vector<8x32xf32>
    %84 = arith.mulf %79, %83 : vector<8x32xf32>
    %c24_32 = arith.constant 24 : index
    %c0_33 = arith.constant 0 : index
    %85 = vector.load %arg13[%c24_32, %c0_33] : memref<64x32xf32, #tpu.memory_space<vmem>>, vector<8x32xf32>
    tpu.vector_store %arg13[%c24_32, %c0_33], %84 {strides = array<i32>} : memref<64x32xf32, #tpu.memory_space<vmem>>, vector<8x32xf32>,
    %c32 = arith.constant 32 : index
    %c0_34 = arith.constant 0 : index
    %86 = vector.load %arg12[%c32, %c0_34] : memref<64x128xf32, #tpu.memory_space<vmem>>, vector<8x128xf32>
    %cst_35 = arith.constant dense<0.000000e+00> : vector<8x128xf32>
    %87 = tpu.matmul %84, %7, %cst_35 {dimension_numbers = #tpu.dot_dimension_numbers<[1], [0], [0], [1], [0, 0, 1, 1], [], []>} : vector<8x32xf32>, vector<32x128xf32>, vector<8x128xf32> -> vector<8x128xf32>
    %88 = arith.addf %86, %87 : vector<8x128xf32>
    %89 = arith.negf %88 : vector<8x128xf32>
    %90 = math.exp %89 : vector<8x128xf32>
    %cst_36 = arith.constant 1.000000e+00 : f32
    %91 = vector.broadcast %cst_36 : f32 to vector<8x128xf32>
    %92 = arith.addf %91, %90 : vector<8x128xf32>
    %93 = arith.divf %91, %92 : vector<8x128xf32>
    %94 = math.tanh %88 : vector<8x128xf32>
    %95 = vector.extract_strided_slice %93 {offsets = [0, 0], sizes = [8, 32], strides = [1, 1]} : vector<8x128xf32> to vector<8x32xf32>
    %96 = vector.extract_strided_slice %93 {offsets = [0, 32], sizes = [8, 32], strides = [1, 1]} : vector<8x128xf32> to vector<8x32xf32>
    %97 = vector.extract_strided_slice %94 {offsets = [0, 64], sizes = [8, 32], strides = [1, 1]} : vector<8x128xf32> to vector<8x32xf32>
    %98 = vector.extract_strided_slice %93 {offsets = [0, 96], sizes = [8, 32], strides = [1, 1]} : vector<8x128xf32> to vector<8x32xf32>
    %99 = arith.mulf %96, %82 : vector<8x32xf32>
    %100 = arith.mulf %95, %97 : vector<8x32xf32>
    %101 = arith.addf %99, %100 : vector<8x32xf32>
    %102 = math.tanh %101 : vector<8x32xf32>
    %103 = arith.mulf %98, %102 : vector<8x32xf32>
    %c32_37 = arith.constant 32 : index
    %c0_38 = arith.constant 0 : index
    %104 = vector.load %arg13[%c32_37, %c0_38] : memref<64x32xf32, #tpu.memory_space<vmem>>, vector<8x32xf32>
    tpu.vector_store %arg13[%c32_37, %c0_38], %103 {strides = array<i32>} : memref<64x32xf32, #tpu.memory_space<vmem>>, vector<8x32xf32>,
    %c40 = arith.constant 40 : index
    %c0_39 = arith.constant 0 : index
    %105 = vector.load %arg12[%c40, %c0_39] : memref<64x128xf32, #tpu.memory_space<vmem>>, vector<8x128xf32>
    %cst_40 = arith.constant dense<0.000000e+00> : vector<8x128xf32>
    %106 = tpu.matmul %103, %7, %cst_40 {dimension_numbers = #tpu.dot_dimension_numbers<[1], [0], [0], [1], [0, 0, 1, 1], [], []>} : vector<8x32xf32>, vector<32x128xf32>, vector<8x128xf32> -> vector<8x128xf32>
    %107 = arith.addf %105, %106 : vector<8x128xf32>
    %108 = arith.negf %107 : vector<8x128xf32>
    %109 = math.exp %108 : vector<8x128xf32>
    %cst_41 = arith.constant 1.000000e+00 : f32
    %110 = vector.broadcast %cst_41 : f32 to vector<8x128xf32>
    %111 = arith.addf %110, %109 : vector<8x128xf32>
    %112 = arith.divf %110, %111 : vector<8x128xf32>
    %113 = math.tanh %107 : vector<8x128xf32>
    %114 = vector.extract_strided_slice %112 {offsets = [0, 0], sizes = [8, 32], strides = [1, 1]} : vector<8x128xf32> to vector<8x32xf32>
    %115 = vector.extract_strided_slice %112 {offsets = [0, 32], sizes = [8, 32], strides = [1, 1]} : vector<8x128xf32> to vector<8x32xf32>
    %116 = vector.extract_strided_slice %113 {offsets = [0, 64], sizes = [8, 32], strides = [1, 1]} : vector<8x128xf32> to vector<8x32xf32>
    %117 = vector.extract_strided_slice %112 {offsets = [0, 96], sizes = [8, 32], strides = [1, 1]} : vector<8x128xf32> to vector<8x32xf32>
    %118 = arith.mulf %115, %101 : vector<8x32xf32>
    %119 = arith.mulf %114, %116 : vector<8x32xf32>
    %120 = arith.addf %118, %119 : vector<8x32xf32>
    %121 = math.tanh %120 : vector<8x32xf32>
    %122 = arith.mulf %117, %121 : vector<8x32xf32>
    %c40_42 = arith.constant 40 : index
    %c0_43 = arith.constant 0 : index
    %123 = vector.load %arg13[%c40_42, %c0_43] : memref<64x32xf32, #tpu.memory_space<vmem>>, vector<8x32xf32>
    tpu.vector_store %arg13[%c40_42, %c0_43], %122 {strides = array<i32>} : memref<64x32xf32, #tpu.memory_space<vmem>>, vector<8x32xf32>,
    %c48 = arith.constant 48 : index
    %c0_44 = arith.constant 0 : index
    %124 = vector.load %arg12[%c48, %c0_44] : memref<64x128xf32, #tpu.memory_space<vmem>>, vector<8x128xf32>
    %cst_45 = arith.constant dense<0.000000e+00> : vector<8x128xf32>
    %125 = tpu.matmul %122, %7, %cst_45 {dimension_numbers = #tpu.dot_dimension_numbers<[1], [0], [0], [1], [0, 0, 1, 1], [], []>} : vector<8x32xf32>, vector<32x128xf32>, vector<8x128xf32> -> vector<8x128xf32>
    %126 = arith.addf %124, %125 : vector<8x128xf32>
    %127 = arith.negf %126 : vector<8x128xf32>
    %128 = math.exp %127 : vector<8x128xf32>
    %cst_46 = arith.constant 1.000000e+00 : f32
    %129 = vector.broadcast %cst_46 : f32 to vector<8x128xf32>
    %130 = arith.addf %129, %128 : vector<8x128xf32>
    %131 = arith.divf %129, %130 : vector<8x128xf32>
    %132 = math.tanh %126 : vector<8x128xf32>
    %133 = vector.extract_strided_slice %131 {offsets = [0, 0], sizes = [8, 32], strides = [1, 1]} : vector<8x128xf32> to vector<8x32xf32>
    %134 = vector.extract_strided_slice %131 {offsets = [0, 32], sizes = [8, 32], strides = [1, 1]} : vector<8x128xf32> to vector<8x32xf32>
    %135 = vector.extract_strided_slice %132 {offsets = [0, 64], sizes = [8, 32], strides = [1, 1]} : vector<8x128xf32> to vector<8x32xf32>
    %136 = vector.extract_strided_slice %131 {offsets = [0, 96], sizes = [8, 32], strides = [1, 1]} : vector<8x128xf32> to vector<8x32xf32>
    %137 = arith.mulf %134, %120 : vector<8x32xf32>
    %138 = arith.mulf %133, %135 : vector<8x32xf32>
    %139 = arith.addf %137, %138 : vector<8x32xf32>
    %140 = math.tanh %139 : vector<8x32xf32>
    %141 = arith.mulf %136, %140 : vector<8x32xf32>
    %c48_47 = arith.constant 48 : index
    %c0_48 = arith.constant 0 : index
    %142 = vector.load %arg13[%c48_47, %c0_48] : memref<64x32xf32, #tpu.memory_space<vmem>>, vector<8x32xf32>
    tpu.vector_store %arg13[%c48_47, %c0_48], %141 {strides = array<i32>} : memref<64x32xf32, #tpu.memory_space<vmem>>, vector<8x32xf32>,
    %c56 = arith.constant 56 : index
    %c0_49 = arith.constant 0 : index
    %143 = vector.load %arg12[%c56, %c0_49] : memref<64x128xf32, #tpu.memory_space<vmem>>, vector<8x128xf32>
    %cst_50 = arith.constant dense<0.000000e+00> : vector<8x128xf32>
    %144 = tpu.matmul %141, %7, %cst_50 {dimension_numbers = #tpu.dot_dimension_numbers<[1], [0], [0], [1], [0, 0, 1, 1], [], []>} : vector<8x32xf32>, vector<32x128xf32>, vector<8x128xf32> -> vector<8x128xf32>
    %145 = arith.addf %143, %144 : vector<8x128xf32>
    %146 = arith.negf %145 : vector<8x128xf32>
    %147 = math.exp %146 : vector<8x128xf32>
    %cst_51 = arith.constant 1.000000e+00 : f32
    %148 = vector.broadcast %cst_51 : f32 to vector<8x128xf32>
    %149 = arith.addf %148, %147 : vector<8x128xf32>
    %150 = arith.divf %148, %149 : vector<8x128xf32>
    %151 = math.tanh %145 : vector<8x128xf32>
    %152 = vector.extract_strided_slice %150 {offsets = [0, 0], sizes = [8, 32], strides = [1, 1]} : vector<8x128xf32> to vector<8x32xf32>
    %153 = vector.extract_strided_slice %150 {offsets = [0, 32], sizes = [8, 32], strides = [1, 1]} : vector<8x128xf32> to vector<8x32xf32>
    %154 = vector.extract_strided_slice %151 {offsets = [0, 64], sizes = [8, 32], strides = [1, 1]} : vector<8x128xf32> to vector<8x32xf32>
    %155 = vector.extract_strided_slice %150 {offsets = [0, 96], sizes = [8, 32], strides = [1, 1]} : vector<8x128xf32> to vector<8x32xf32>
    %156 = arith.mulf %153, %139 : vector<8x32xf32>
    %157 = arith.mulf %152, %154 : vector<8x32xf32>
    %158 = arith.addf %156, %157 : vector<8x32xf32>
    %159 = math.tanh %158 : vector<8x32xf32>
    %160 = arith.mulf %155, %159 : vector<8x32xf32>
    %c56_52 = arith.constant 56 : index
    %c0_53 = arith.constant 0 : index
    %161 = vector.load %arg13[%c56_52, %c0_53] : memref<64x32xf32, #tpu.memory_space<vmem>>, vector<8x32xf32>
    tpu.vector_store %arg13[%c56_52, %c0_53], %160 {strides = array<i32>} : memref<64x32xf32, #tpu.memory_space<vmem>>, vector<8x32xf32>,
    %c0_54 = arith.constant 0 : index
    %c0_55 = arith.constant 0 : index
    %162 = vector.load %arg10[%c0_54, %c0_55] : memref<8x32xf32, #tpu.memory_space<vmem>>, vector<8x32xf32>
    tpu.vector_store %arg10[%c0_54, %c0_55], %160 {strides = array<i32>} : memref<8x32xf32, #tpu.memory_space<vmem>>, vector<8x32xf32>,
    %c0_56 = arith.constant 0 : index
    %c0_57 = arith.constant 0 : index
    %163 = vector.load %arg11[%c0_56, %c0_57] : memref<8x32xf32, #tpu.memory_space<vmem>>, vector<8x32xf32>
    tpu.vector_store %arg11[%c0_56, %c0_57], %158 {strides = array<i32>} : memref<8x32xf32, #tpu.memory_space<vmem>>, vector<8x32xf32>,
    %c0_58 = arith.constant 0 : index
    %c0_59 = arith.constant 0 : index
    %164 = vector.load %arg7[%c0_58, %c0_59] : memref<32x128xf32, #tpu.memory_space<vmem>>, vector<32x128xf32>
    %c0_60 = arith.constant 0 : index
    %c0_61 = arith.constant 0 : index
    %165 = vector.load %arg13[%c0_60, %c0_61] : memref<64x32xf32, #tpu.memory_space<vmem>>, vector<64x32xf32>
    %cst_62 = arith.constant dense<0.000000e+00> : vector<64x128xf32>
    %166 = tpu.matmul %165, %164, %cst_62 {dimension_numbers = #tpu.dot_dimension_numbers<[1], [0], [0], [1], [0, 0, 1, 1], [], []>} : vector<64x32xf32>, vector<32x128xf32>, vector<64x128xf32> -> vector<64x128xf32>
    %c0_63 = arith.constant 0 : index
    %c0_64 = arith.constant 0 : index
    %167 = vector.load %arg8[%c0_63, %c0_64] : memref<1x128xf32, #tpu.memory_space<vmem>>, vector<1x128xf32>
    %168 = vector.broadcast %167 : vector<1x128xf32> to vector<64x128xf32>
    %169 = arith.addf %166, %168 : vector<64x128xf32>
    %cst_65 = arith.constant dense<0xFF800000> : vector<64xf32>
    %170 = vector.multi_reduction <maximumf>, %169, %cst_65 [1] : vector<64x128xf32> to vector<64xf32>
    %171 = vector.shape_cast %170 : vector<64xf32> to vector<64x1xf32>
    %172 = vector.broadcast %171 : vector<64x1xf32> to vector<64x128xf32>
    %173 = arith.subf %169, %172 : vector<64x128xf32>
    %174 = math.exp %173 : vector<64x128xf32>
    %cst_66 = arith.constant dense<0.000000e+00> : vector<64xf32>
    %175 = vector.multi_reduction <add>, %174, %cst_66 [1] : vector<64x128xf32> to vector<64xf32>
    %176 = vector.shape_cast %175 : vector<64xf32> to vector<64x1xf32>
    %177 = math.log %176 : vector<64x1xf32>
    %178 = arith.addf %177, %171 : vector<64x1xf32>
    %179 = vector.broadcast %178 : vector<64x1xf32> to vector<64x128xf32>
    %180 = arith.subf %169, %179 : vector<64x128xf32>
    %c0_67 = arith.constant 0 : index
    %c0_68 = arith.constant 0 : index
    %181 = vector.load %arg9[%c0_67, %c0_68] : memref<64x128xf32, #tpu.memory_space<vmem>>, vector<64x128xf32>
    tpu.vector_store %arg9[%c0_67, %c0_68], %180 {strides = array<i32>} : memref<64x128xf32, #tpu.memory_space<vmem>>, vector<64x128xf32>,
    return
  }
  func.func @transform_0(%arg0: i32) -> (i32, i32) {
    %c0_i32 = arith.constant 0 : i32
    %c0_i32_0 = arith.constant 0 : i32
    %c0_i32_1 = arith.constant 0 : i32
    return %c0_i32, %c0_i32_0 : i32, i32
  }
  func.func @transform_1(%arg0: i32) -> (i32, i32) {
    %c0_i32 = arith.constant 0 : i32
    %c0_i32_0 = arith.constant 0 : i32
    %c0_i32_1 = arith.constant 0 : i32
    return %c0_i32, %c0_i32_0 : i32, i32
  }
  func.func @transform_2(%arg0: i32) -> (i32, i32) {
    %c0_i32 = arith.constant 0 : i32
    %c0_i32_0 = arith.constant 0 : i32
    %c0_i32_1 = arith.constant 0 : i32
    return %c0_i32, %c0_i32_0 : i32, i32
  }
  func.func @transform_3(%arg0: i32) -> (i32, i32) {
    %c0_i32 = arith.constant 0 : i32
    %c0_i32_0 = arith.constant 0 : i32
    %c0_i32_1 = arith.constant 0 : i32
    return %c0_i32, %c0_i32_0 : i32, i32
  }
  func.func @transform_4(%arg0: i32) -> (i32, i32) {
    %c0_i32 = arith.constant 0 : i32
    %c0_i32_0 = arith.constant 0 : i32
    %c0_i32_1 = arith.constant 0 : i32
    return %c0_i32, %c0_i32_0 : i32, i32
  }
  func.func @transform_5(%arg0: i32) -> (i32, i32) {
    %c0_i32 = arith.constant 0 : i32
    %c0_i32_0 = arith.constant 0 : i32
    %c0_i32_1 = arith.constant 0 : i32
    return %c0_i32, %c0_i32_0 : i32, i32
  }
  func.func @transform_6(%arg0: i32) -> (i32, i32) {
    %c0_i32 = arith.constant 0 : i32
    %c0_i32_0 = arith.constant 0 : i32
    %c0_i32_1 = arith.constant 0 : i32
    return %c0_i32, %c0_i32_0 : i32, i32
  }
  func.func @transform_7(%arg0: i32) -> (i32, i32) {
    %c0_i32 = arith.constant 0 : i32
    %c0_i32_0 = arith.constant 0 : i32
    %c0_i32_1 = arith.constant 0 : i32
    return %c0_i32, %c0_i32_0 : i32, i32
  }
  func.func @transform_8(%arg0: i32) -> (i32, i32) {
    %c0_i32 = arith.constant 0 : i32
    %c0_i32_0 = arith.constant 0 : i32
    %c0_i32_1 = arith.constant 0 : i32
    return %c0_i32, %c0_i32_0 : i32, i32
  }
  func.func @transform_9(%arg0: i32) -> (i32, i32) {
    %c0_i32 = arith.constant 0 : i32
    %c0_i32_0 = arith.constant 0 : i32
    %c0_i32_1 = arith.constant 0 : i32
    return %c0_i32, %c0_i32_0 : i32, i32
  }
  func.func @transform_10(%arg0: i32) -> (i32, i32) {
    %c0_i32 = arith.constant 0 : i32
    %c0_i32_0 = arith.constant 0 : i32
    %c0_i32_1 = arith.constant 0 : i32
    return %c0_i32, %c0_i32_0 : i32, i32
  }
}

</mosaic_0001>

<bundles_post_ra>
// kernel: actor_network_forward.1
= control target key start
LH: loop header
LB: loop body
LE: loop exit
PB: predicated region body
PF: predicated region fallthrough
CT: control target
= control target key end

     0   :  { %vm49_vm0 = vcmask 130048   ;;  %v1610_v6 = vmov 0.0   ;;  %vm1611_vm1 = vmmov 0   ;;  %vm194_vm2 = vcmask 261120   ;;  %s1612_s18 = smov 64   ;;  %s1613_s21 = smov 32   ;;  %s2019_s1 = inlined_call_operand.vmem [shape: f32[16,128], index: 1, kind: input, shape index: {}]   ;;  %s2020_s0 = inlined_call_operand.vmem [shape: f32[64,16], index: 0, kind: input, shape index: {}]   ;;  %s2021_s5 = inlined_call_operand.vmem [shape: f32[32,128], index: 5, kind: input, shape index: {}]   ;;  %s2022_s3 = inlined_call_operand.vmem [shape: f32[8,32], index: 3, kind: input, shape index: {}]   ;;  %s2023_s2 = inlined_call_operand.vmem [shape: f32[1,128], index: 2, kind: input, shape index: {}]   ;;  %s2024_s4 = inlined_call_operand.vmem [shape: f32[8,32], index: 4, kind: input, shape index: {}]   ;;  %s2025_s6 = inlined_call_operand.vmem [shape: f32[32,128], index: 6, kind: input, shape index: {}]   ;;  %s2026_s7 = inlined_call_operand.vmem [shape: f32[1,128], index: 7, kind: input, shape index: {}]   ;;  %s2027_s9 = inlined_call_operand.vmem [shape: f32[8,32], index: 9, kind: output, shape index: {1}]   ;;  %s2028_s8 = inlined_call_operand.vmem [shape: f32[64,128], index: 8, kind: output, shape index: {0}]   ;;  %s2029_s10 = inlined_call_operand.vmem [shape: f32[8,32], index: 10, kind: output, shape index: {2}]  }
   0x1   :  { %v33_v0 = vld [vmem:[%s2019_s1 + $0x8] sm:$0xff]  ;;  %v32_v1 = vld [vmem:[%s2019_s1] sm:$0xff]  ;;  %v1686_v4 = vld [vmem:[%s2021_s5 + $0x18] sm:$0xff] }
   0x2   :  { %v38_v2 = vld [vmem:[%s2020_s0 + $0x20] sm:$0xff]  ;;  %1505 = vmatprep.subr.mxu1 %v33_v0  ;;  %1381 = vmatprep.subr.mxu0 %v33_v0  ;;  %v39_v3 = vld [vmem:[%s2020_s0 + $0x28] sm:$0xff]  ;;  %v40_v8 = vld [vmem:[%s2020_s0 + $0x30] sm:$0xff] }
   0x3   :  { %1507 = vmatpush3.msra.mxu1 %v33_v0  ;;  %1391 = vmatprep.mubr.msk.f32.mxu1 %vm49_vm0, %v38_v2  ;;  %v34_v5 = vld [vmem:[%s2020_s0] sm:$0xff]  ;;  %v35_v7 = vld [vmem:[%s2020_s0 + $0x8] sm:$0xff]  ;;  %v1703_v9 = vld [vmem:[%s2021_s5 + $0x10] sm:$0xff] }
   0x4   :  { %1506 = vmatprep.subr.mxu1 %v32_v1  ;;  %1382 = vmatpush3.msra.mxu0 %v33_v0  ;;  %v41_v10 = vld [vmem:[%s2020_s0 + $0x38] sm:$0xff]  ;;  %v1715_v11 = vld [vmem:[%s2021_s5 + $0x8] sm:$0xff]  ;;  %v1724_v12 = vld [vmem:[%s2021_s5] sm:$0xff] }
   0x5   :  { %1508 = vmatpush3.msra.mxu1 %v32_v1  ;;  %1383 = vmatprep.subr.mxu0 %v32_v1  ;;  %v191_v13 = vld [vmem:[%s2022_s3] sm:$0xff]  ;;  %v36_v55 = vld [vmem:[%s2020_s0 + $0x10] sm:$0xff]  ;;  %v37_v56 = vld [vmem:[%s2020_s0 + $0x18] sm:$0xff] }
   0x6   :  { %1392 = vmatmul.mubr.msk.f32.vlgmr.msra.gmra.mxu1 %vm49_vm0, %v39_v3  ;;  %1397 = vmatprep.subr.mxu1 %v1610_v6  ;;  %v1763_v19 = vld [vmem:[%s2023_s2] ss:$0 sm:$0xff] }
   0x7   :  { %1398 = vmatpush3.msra.mxu1 %v1686_v4  ;;  %1384 = vmatpush3.msra.mxu0 %v32_v1  ;;  %v192_v26 = vld [vmem:[%s2024_s4] sm:$0xff] }
   0x8   :  { %1385 = vmatprep.mubr.msk.f32.mxu0 %vm49_vm0, %v34_v5  ;;  %1399 = vmatprep.subr.mxu1 %v1610_v6 }
   0x9   :  { %1386 = vmatmul.mubr.msk.f32.vlgmr.msra.gmra.mxu0 %vm49_vm0, %v35_v7  ;;  %1394 = vmatprep.mubr.msk.f32.mxu1 %vm49_vm0, %v40_v8 }
   0xa   :  { %1400 = vmatpush3.msra.mxu1 %v1703_v9  ;;  %1419 = vmatprep.subr.mxu0 %v1610_v6 }
   0xb   :  { %1395 = vmatmul.mubr.msk.f32.gmra.mxu1 %vm49_vm0, %v41_v10  ;;  %1401 = vmatprep.subr.mxu1 %v1610_v6 }
   0xc   :  { %1402 = vmatpush3.msra.mxu1 %v1715_v11  ;;  %1405 = vmatprep.mubr.msk.f32.mxu1 %vm1611_vm1, %v1610_v6 }
   0xd   :  { %1403 = vmatprep.subr.mxu1 %v1610_v6  ;;  %1420 = vmatpush3.msra.mxu0 %v1686_v4 }
   0xe   :  { %1404 = vmatpush3.msra.mxu1 %v1724_v12  ;;  %1421 = vmatprep.subr.mxu0 %v1610_v6 }
   0xf   :  { %1406 = vmatmul.mubr.msk.f32.vlgmr.msra.gmra.mxu1 %vm194_vm2, %v191_v13  ;;  %1408 = vmatprep.subr.mxu1 %v1610_v6 }
  0x10   :  { %1409 = vmatpush3.msra.mxu1 %v1686_v4  ;;  %1416 = vmatprep.mubr.msk.f32.mxu1 %vm1611_vm1, %v1610_v6 }
  0x11   :  { %1410 = vmatprep.subr.mxu1 %v1610_v6  ;;  %1422 = vmatpush3.msra.mxu0 %v1703_v9 }
  0x12   :  { %1411 = vmatpush3.msra.mxu1 %v1703_v9  ;;  %1423 = vmatprep.subr.mxu0 %v1610_v6 }
  0x13   :  { %1412 = vmatprep.subr.mxu1 %v1610_v6  ;;  %1424 = vmatpush3.msra.mxu0 %v1715_v11 }
  0x14   :  { %1413 = vmatpush3.msra.mxu1 %v1715_v11  ;;  %1425 = vmatprep.subr.mxu0 %v1610_v6 }
  0x15   :  { %1414 = vmatprep.subr.mxu1 %v1610_v6  ;;  %1426 = vmatpush3.msra.mxu0 %v1724_v12 }
  0x16   :  { %1415 = vmatpush3.msra.mxu1 %v1724_v12  ;;  %1441 = vmatprep.subr.mxu0 %v1610_v6 }
  0x17   :  { %1430 = vmatprep.subr.mxu1 %v1610_v6  ;;  %1388 = vmatprep.mubr.msk.f32.mxu0 %vm49_vm0, %v36_v55 }
  0x18   :  { %1389 = vmatmul.mubr.msk.f32.gmra.mxu0 %vm49_vm0, %v37_v56 }
  0x19   :  { %1427 = vmatprep.mubr.msk.f32.mxu0 %vm1611_vm1, %v1610_v6 }
  0xc6   :  { %v1754_v14 = vpop.f32.mrf.mxu1 }
  0xc8   :  { %v1756_v15 = vpop.f32.mrf.mxu1 }
  0xc9   :  { %v1387_v16 = vpop.f32.mrf.mxu0 }
  0xca   :  { %v146_v41 = vadd.f32 %v1387_v16, %v1763_v19 }
  0xcb   :  { %v1758_v17 = vpop.f32.mrf.mxu1  ;;  %v140_v18 = vpop.f32.mrf.mxu0 }
  0xcc   :  { %v141_v21 = vadd.f32 %v1763_v19, %v140_v18 }
  0xcd   :  { %v1765_v20 = vpop.f32.mrf.mxu1 }
  0xcf   :  { %v264_v22 = vpop.f32.mrf.mxu1 }
  0xd0   :  { %v268_v23 = vadd.f32 %v264_v22, %v141_v21 }
  0xd1   :  { %v1407_v24 = vpop.f32.mrf.mxu1 }
  0xd2   :  { %1514 = vtanh.f32 %v268_v23  ;;  %v1295_v27 = vmul.f32 -1.442695, %v268_v23 }
  0xd4   :  { %1516 = vpow2.f32 %v1295_v27 }
  0xd8   :  { %v1390_v61 = vpop.f32.mrf.mxu0 }
  0xd9   :  { %v156_v27 = vadd.f32 %v1390_v61, %v1763_v19 }
  0xda   :  { %v150_v62 = vpop.f32.mrf.mxu0 }
  0xdb   :  { %v151_v63 = vadd.f32 %v1763_v19, %v150_v62  ;;  %v166_v62 = vadd.f32 %v1754_v14, %v1763_v19 }
  0xdf   :  { %v1515_v25 = vpop.eup %1514 }
  0xe0   :  { %282 = vrot.lane.b32.xlu0 %v1515_v25, %s1612_s18 }
  0xe1   :  { %v1517_v28 = vpop.eup %1516 }
  0xe2   :  { %v272_v29 = vadd.f32 1.0, %v1517_v28 }
  0xe4   :  { %277 = vrot.lane.b32.xlu0 %v192_v26, %s1613_s21  ;;  %1518 = vrcp.f32 %v272_v29 }
  0xf1   :  { %v1519_v30 = vpop.eup %1518 }
 0x152   :  { %v283_v31 = vpop.permute.xlu0 %282 }
 0x153   :  { %v285_v32 = vmul.f32 %v1519_v30, %v283_v31 }
 0x155   :  { %287 = vrot.lane.b32.xlu1 %v285_v32, %s1613_s21 }
 0x156   :  { %v278_v33 = vpop.permute.xlu0 %277 }
 0x157   :  { %v280_v34 = vmul.f32 %v1519_v30, %v278_v33 }
 0x1c7   :  { %v288_v35 = vpop.permute.xlu1 %287 }
 0x1c8   :  { %v290_v36 = vadd.f32 %v288_v35, %v280_v34 }
 0x1ca   :  { %1520 = vtanh.f32 %v290_v36 }
 0x1d7   :  { %v1521_v37 = vpop.eup %1520 }
 0x1d8   :  { %293 = vrot.lane.b32.xlu1 %v1521_v37, %s1612_s18 }
 0x24a   :  { %v294_v38 = vpop.permute.xlu1 %293 }
 0x24b   :  { %v296_v39 = vmul.f32 %v1519_v30, %v294_v38 }
 0x24d   :  { %298 = vrot.lane.b32.xlu0 %v296_v39, %s1613_s21 }
 0x2bf   :  { %v299_v40 = vpop.permute.xlu0 %298 }
 0x2c0   :  { %301 = vst.msk [vmem:[#allocation3] sm:$0xff] %vm194_vm2, %v299_v40  ;;  %1417 = vmatmul.mubr.msk.f32.vlgmr.msra.gmra.mxu1 %vm194_vm2, %v299_v40 }
 0x2c1   :  { %1431 = vmatpush3.msra.mxu1 %v1686_v4  ;;  %1438 = vmatprep.mubr.msk.f32.mxu1 %vm1611_vm1, %v1610_v6 }
 0x2c2   :  { %1432 = vmatprep.subr.mxu1 %v1610_v6 }
 0x2c3   :  { %1433 = vmatpush3.msra.mxu1 %v1703_v9 }
 0x2c4   :  { %1434 = vmatprep.subr.mxu1 %v1610_v6 }
 0x2c5   :  { %1435 = vmatpush3.msra.mxu1 %v1715_v11 }
 0x2c6   :  { %1436 = vmatprep.subr.mxu1 %v1610_v6 }
 0x2c7   :  { %1437 = vmatpush3.msra.mxu1 %v1724_v12 }
 0x2c8   :  { %1452 = vmatprep.subr.mxu1 %v1610_v6 }
 0x380   :  { %v371_v42 = vpop.f32.mrf.mxu1 }
 0x381   :  { %v375_v43 = vadd.f32 %v371_v42, %v146_v41 }
 0x382   :  { %v1418_v44 = vpop.f32.mrf.mxu1 }
 0x383   :  { %1522 = vtanh.f32 %v375_v43  ;;  %v1297_v46 = vmul.f32 -1.442695, %v375_v43 }
 0x385   :  { %1524 = vpow2.f32 %v1297_v46 }
 0x390   :  { %v1523_v45 = vpop.eup %1522 }
 0x391   :  { %385 = vrot.lane.b32.xlu1 %v1523_v45, %s1612_s18  ;;  %v161_v45 = vadd.f32 %v1763_v19, %v1756_v15 }
 0x392   :  { %v1525_v47 = vpop.eup %1524 }
 0x393   :  { %v379_v48 = vadd.f32 1.0, %v1525_v47 }
 0x395   :  { %1526 = vrcp.f32 %v379_v48 }
 0x3a2   :  { %v1527_v49 = vpop.eup %1526 }
 0x3a3   :  { %v383_v52 = vmul.f32 %v1527_v49, %v290_v36 }
 0x403   :  { %v386_v50 = vpop.permute.xlu1 %385 }
 0x404   :  { %v388_v51 = vmul.f32 %v1527_v49, %v386_v50 }
 0x406   :  { %390 = vrot.lane.b32.xlu0 %v388_v51, %s1613_s21 }
 0x478   :  { %v391_v53 = vpop.permute.xlu0 %390 }
 0x479   :  { %v393_v54 = vadd.f32 %v391_v53, %v383_v52 }
 0x47b   :  { %1528 = vtanh.f32 %v393_v54 }
 0x488   :  { %v1529_v57 = vpop.eup %1528 }
 0x489   :  { %396 = vrot.lane.b32.xlu1 %v1529_v57, %s1612_s18 }
 0x4fb   :  { %v397_v58 = vpop.permute.xlu1 %396 }
 0x4fc   :  { %v399_v59 = vmul.f32 %v1527_v49, %v397_v58 }
 0x4fe   :  { %401 = vrot.lane.b32.xlu0 %v399_v59, %s1613_s21 }
 0x570   :  { %v402_v60 = vpop.permute.xlu0 %401 }
 0x571   :  { %404 = vst.msk [vmem:[#allocation3 + $0x8] sm:$0xff] %vm194_vm2, %v402_v60  ;;  %1428 = vmatmul.mubr.msk.f32.vlgmr.msra.gmra.mxu0 %vm194_vm2, %v402_v60 }
 0x572   :  { %1442 = vmatpush3.msra.mxu0 %v1686_v4  ;;  %1449 = vmatprep.mubr.msk.f32.mxu0 %vm1611_vm1, %v1610_v6 }
 0x573   :  { %1443 = vmatprep.subr.mxu0 %v1610_v6 }
 0x574   :  { %1444 = vmatpush3.msra.mxu0 %v1703_v9 }
 0x575   :  { %1445 = vmatprep.subr.mxu0 %v1610_v6 }
 0x576   :  { %1446 = vmatpush3.msra.mxu0 %v1715_v11 }
 0x577   :  { %1447 = vmatprep.subr.mxu0 %v1610_v6 }
 0x578   :  { %1448 = vmatpush3.msra.mxu0 %v1724_v12 }
 0x579   :  { %1463 = vmatprep.subr.mxu0 %v1610_v6 }
 0x631   :  { %v474_v0 = vpop.f32.mrf.mxu0 }
 0x632   :  { %v478_v1 = vadd.f32 %v474_v0, %v151_v63 }
 0x633   :  { %v1429_v2 = vpop.f32.mrf.mxu0 }
 0x634   :  { %1530 = vtanh.f32 %v478_v1  ;;  %v1299_v5 = vmul.f32 -1.442695, %v478_v1 }
 0x636   :  { %1532 = vpow2.f32 %v1299_v5 }
 0x641   :  { %v1531_v3 = vpop.eup %1530 }
 0x642   :  { %488 = vrot.lane.b32.xlu1 %v1531_v3, %s1612_s18 }
 0x643   :  { %v1533_v7 = vpop.eup %1532 }
 0x644   :  { %v482_v8 = vadd.f32 1.0, %v1533_v7 }
 0x646   :  { %1534 = vrcp.f32 %v482_v8  ;;  %v1032_v8 = vld [vmem:[%s2025_s6 + $0x18] sm:$0xff] }
 0x653   :  { %v1535_v10 = vpop.eup %1534 }
 0x654   :  { %v486_v18 = vmul.f32 %v1535_v10, %v393_v54 }
 0x6b4   :  { %v489_v13 = vpop.permute.xlu1 %488 }
 0x6b5   :  { %v491_v16 = vmul.f32 %v1535_v10, %v489_v13 }
 0x6b7   :  { %493 = vrot.lane.b32.xlu0 %v491_v16, %s1613_s21 }
 0x729   :  { %v494_v21 = vpop.permute.xlu0 %493 }
 0x72a   :  { %v496_v22 = vadd.f32 %v494_v21, %v486_v18  ;;  %v1031_v21 = vld [vmem:[%s2025_s6 + $0x10] sm:$0xff] }
 0x72c   :  { %1536 = vtanh.f32 %v496_v22 }
 0x739   :  { %v1537_v23 = vpop.eup %1536 }
 0x73a   :  { %499 = vrot.lane.b32.xlu1 %v1537_v23, %s1612_s18  ;;  %v1030_v23 = vld [vmem:[%s2025_s6 + $0x8] sm:$0xff] }
 0x7ac   :  { %v500_v24 = vpop.permute.xlu1 %499 }
 0x7ad   :  { %v502_v25 = vmul.f32 %v1535_v10, %v500_v24  ;;  %v1029_v24 = vld [vmem:[%s2025_s6] sm:$0xff] }
 0x7af   :  { %504 = vrot.lane.b32.xlu0 %v502_v25, %s1613_s21  ;;  %v1034_v25 = vld [vmem:[#allocation3 + $0x8] sm:$0xff] }
 0x821   :  { %v505_v26 = vpop.permute.xlu0 %504 }
 0x822   :  { %507 = vst.msk [vmem:[#allocation3 + $0x10] sm:$0xff] %vm194_vm2, %v505_v26  ;;  %1439 = vmatmul.mubr.msk.f32.vlgmr.msra.gmra.mxu1 %vm194_vm2, %v505_v26 }
 0x823   :  { %1453 = vmatpush3.msra.mxu1 %v1686_v4  ;;  %1460 = vmatprep.mubr.msk.f32.mxu1 %vm1611_vm1, %v1610_v6 }
 0x824   :  { %1454 = vmatprep.subr.mxu1 %v1610_v6 }
 0x825   :  { %1455 = vmatpush3.msra.mxu1 %v1703_v9 }
 0x826   :  { %1456 = vmatprep.subr.mxu1 %v1610_v6 }
 0x827   :  { %1457 = vmatpush3.msra.mxu1 %v1715_v11 }
 0x828   :  { %1458 = vmatprep.subr.mxu1 %v1610_v6 }
 0x829   :  { %1459 = vmatpush3.msra.mxu1 %v1724_v12  ;;  %v1035_v26 = vld [vmem:[#allocation3 + $0x10] sm:$0xff] }
 0x82a   :  { %1474 = vmatprep.subr.mxu1 %v1610_v6 }
 0x8e2   :  { %v577_v28 = vpop.f32.mrf.mxu1 }
 0x8e3   :  { %v581_v29 = vadd.f32 %v577_v28, %v156_v27 }
 0x8e4   :  { %v1440_v30 = vpop.f32.mrf.mxu1 }
 0x8e5   :  { %1538 = vtanh.f32 %v581_v29  ;;  %v1301_v32 = vmul.f32 -1.442695, %v581_v29  ;;  %v171_v30 = vadd.f32 %v1763_v19, %v1765_v20 }
 0x8e7   :  { %1540 = vpow2.f32 %v1301_v32 }
 0x8f2   :  { %v1539_v31 = vpop.eup %1538 }
 0x8f3   :  { %591 = vrot.lane.b32.xlu1 %v1539_v31, %s1612_s18 }
 0x8f4   :  { %v1541_v33 = vpop.eup %1540 }
 0x8f5   :  { %v585_v34 = vadd.f32 1.0, %v1541_v33 }
 0x8f7   :  { %1542 = vrcp.f32 %v585_v34 }
 0x904   :  { %v1543_v35 = vpop.eup %1542 }
 0x905   :  { %v589_v38 = vmul.f32 %v1543_v35, %v496_v22  ;;  %v1033_v22 = vld [vmem:[#allocation3] sm:$0xff] }
 0x965   :  { %v592_v36 = vpop.permute.xlu1 %591 }
 0x966   :  { %v594_v37 = vmul.f32 %v1543_v35, %v592_v36 }
 0x968   :  { %596 = vrot.lane.b32.xlu0 %v594_v37, %s1613_s21 }
 0x9da   :  { %v597_v39 = vpop.permute.xlu0 %596 }
 0x9db   :  { %v599_v40 = vadd.f32 %v597_v39, %v589_v38 }
 0x9dd   :  { %1544 = vtanh.f32 %v599_v40 }
 0x9ea   :  { %v1545_v41 = vpop.eup %1544 }
 0x9eb   :  { %602 = vrot.lane.b32.xlu1 %v1545_v41, %s1612_s18 }
 0xa5d   :  { %v603_v42 = vpop.permute.xlu1 %602 }
 0xa5e   :  { %v605_v43 = vmul.f32 %v1543_v35, %v603_v42 }
 0xa60   :  { %607 = vrot.lane.b32.xlu0 %v605_v43, %s1613_s21 }
 0xad2   :  { %v608_v44 = vpop.permute.xlu0 %607 }
 0xad3   :  { %610 = vst.msk [vmem:[#allocation3 + $0x18] sm:$0xff] %vm194_vm2, %v608_v44  ;;  %1450 = vmatmul.mubr.msk.f32.vlgmr.msra.gmra.mxu0 %vm194_vm2, %v608_v44 }
 0xad4   :  { %1464 = vmatpush3.msra.mxu0 %v1686_v4  ;;  %1471 = vmatprep.mubr.msk.f32.mxu0 %vm1611_vm1, %v1610_v6 }
 0xad5   :  { %1465 = vmatprep.subr.mxu0 %v1610_v6 }
 0xad6   :  { %1466 = vmatpush3.msra.mxu0 %v1703_v9 }
 0xad7   :  { %1467 = vmatprep.subr.mxu0 %v1610_v6 }
 0xad8   :  { %1468 = vmatpush3.msra.mxu0 %v1715_v11 }
 0xad9   :  { %1469 = vmatprep.subr.mxu0 %v1610_v6 }
 0xada   :  { %1470 = vmatpush3.msra.mxu0 %v1724_v12  ;;  %v1036_v27 = vld [vmem:[#allocation3 + $0x18] sm:$0xff] }
 0xadb   :  { %1485 = vmatprep.subr.mxu0 %v1032_v8 }
 0xb93   :  { %v680_v46 = vpop.f32.mrf.mxu0 }
 0xb94   :  { %v684_v47 = vadd.f32 %v680_v46, %v161_v45 }
 0xb95   :  { %v1451_v48 = vpop.f32.mrf.mxu0 }
 0xb96   :  { %1546 = vtanh.f32 %v684_v47  ;;  %v1303_v50 = vmul.f32 -1.442695, %v684_v47  ;;  %v176_v48 = vadd.f32 %v1758_v17, %v1763_v19 }
 0xb98   :  { %1548 = vpow2.f32 %v1303_v50 }
 0xba3   :  { %v1547_v49 = vpop.eup %1546 }
 0xba4   :  { %694 = vrot.lane.b32.xlu1 %v1547_v49, %s1612_s18 }
 0xba5   :  { %v1549_v51 = vpop.eup %1548 }
 0xba6   :  { %v688_v52 = vadd.f32 1.0, %v1549_v51 }
 0xba8   :  { %1550 = vrcp.f32 %v688_v52 }
 0xbb5   :  { %v1551_v53 = vpop.eup %1550 }
 0xbb6   :  { %v692_v56 = vmul.f32 %v1551_v53, %v599_v40 }
 0xc16   :  { %v695_v54 = vpop.permute.xlu1 %694 }
 0xc17   :  { %v697_v55 = vmul.f32 %v1551_v53, %v695_v54 }
 0xc19   :  { %699 = vrot.lane.b32.xlu0 %v697_v55, %s1613_s21 }
 0xc8b   :  { %v700_v57 = vpop.permute.xlu0 %699 }
 0xc8c   :  { %v702_v15 = vadd.f32 %v700_v57, %v692_v56 }
 0xc8e   :  { %1552 = vtanh.f32 %v702_v15 }
 0xc9b   :  { %v1553_v58 = vpop.eup %1552 }
 0xc9c   :  { %705 = vrot.lane.b32.xlu1 %v1553_v58, %s1612_s18 }
 0xd0e   :  { %v706_v59 = vpop.permute.xlu1 %705 }
 0xd0f   :  { %v708_v60 = vmul.f32 %v1551_v53, %v706_v59 }
 0xd11   :  { %710 = vrot.lane.b32.xlu0 %v708_v60, %s1613_s21 }
 0xd83   :  { %v711_v61 = vpop.permute.xlu0 %710 }
 0xd84   :  { %713 = vst.msk [vmem:[#allocation3 + $0x20] sm:$0xff] %vm194_vm2, %v711_v61  ;;  %1461 = vmatmul.mubr.msk.f32.vlgmr.msra.gmra.mxu1 %vm194_vm2, %v711_v61 }
 0xd85   :  { %1475 = vmatpush3.msra.mxu1 %v1686_v4  ;;  %1482 = vmatprep.mubr.msk.f32.mxu1 %vm1611_vm1, %v1610_v6 }
 0xd86   :  { %1476 = vmatprep.subr.mxu1 %v1610_v6 }
 0xd87   :  { %1477 = vmatpush3.msra.mxu1 %v1703_v9 }
 0xd88   :  { %1478 = vmatprep.subr.mxu1 %v1610_v6 }
 0xd89   :  { %1479 = vmatpush3.msra.mxu1 %v1715_v11 }
 0xd8a   :  { %1480 = vmatprep.subr.mxu1 %v1610_v6 }
 0xd8b   :  { %1481 = vmatpush3.msra.mxu1 %v1724_v12  ;;  %v1037_v28 = vld [vmem:[#allocation3 + $0x20] sm:$0xff] }
 0xe44   :  { %v783_v63 = vpop.f32.mrf.mxu1 }
 0xe45   :  { %v787_v4 = vadd.f32 %v783_v63, %v166_v62  ;;  %v1310_v63 = vld [vmem:[%s2026_s7] ss:$0 sm:$0xff] }
 0xe46   :  { %v1462_v0 = vpop.f32.mrf.mxu1 }
 0xe47   :  { %1554 = vtanh.f32 %v787_v4  ;;  %v1305_v2 = vmul.f32 -1.442695, %v787_v4 }
 0xe49   :  { %1556 = vpow2.f32 %v1305_v2 }
 0xe54   :  { %v1555_v1 = vpop.eup %1554 }
 0xe55   :  { %797 = vrot.lane.b32.xlu1 %v1555_v1, %s1612_s18 }
 0xe56   :  { %v1557_v9 = vpop.eup %1556 }
 0xe57   :  { %v791_v3 = vadd.f32 1.0, %v1557_v9 }
 0xe59   :  { %1558 = vrcp.f32 %v791_v3 }
 0xe66   :  { %v1559_v11 = vpop.eup %1558 }
 0xe67   :  { %v795_v12 = vmul.f32 %v1559_v11, %v702_v15 }
 0xec7   :  { %v798_v5 = vpop.permute.xlu1 %797 }
 0xec8   :  { %v800_v6 = vmul.f32 %v1559_v11, %v798_v5 }
 0xeca   :  { %802 = vrot.lane.b32.xlu0 %v800_v6, %s1613_s21 }
 0xf3c   :  { %v803_v7 = vpop.permute.xlu0 %802 }
 0xf3d   :  { %v805_v14 = vadd.f32 %v803_v7, %v795_v12 }
 0xf3f   :  { %1560 = vtanh.f32 %v805_v14 }
 0xf4c   :  { %v1561_v10 = vpop.eup %1560 }
 0xf4d   :  { %808 = vrot.lane.b32.xlu1 %v1561_v10, %s1612_s18 }
 0xfbf   :  { %v809_v13 = vpop.permute.xlu1 %808 }
 0xfc0   :  { %v811_v16 = vmul.f32 %v1559_v11, %v809_v13 }
 0xfc2   :  { %813 = vrot.lane.b32.xlu0 %v811_v16, %s1613_s21 }
0x1034   :  { %v814_v18 = vpop.permute.xlu0 %813 }
0x1035   :  { %816 = vst.msk [vmem:[#allocation3 + $0x28] sm:$0xff] %vm194_vm2, %v814_v18  ;;  %1472 = vmatmul.mubr.msk.f32.vlgmr.msra.gmra.mxu0 %vm194_vm2, %v814_v18 }
0x1036   :  { %1486 = vmatpush3.msra.mxu0 %v1032_v8  ;;  %1493 = vmatprep.mubr.msk.f32.mxu0 %vm194_vm2, %v1033_v22 }
0x1037   :  { %1487 = vmatprep.subr.mxu0 %v1031_v21 }
0x1038   :  { %1488 = vmatpush3.msra.mxu0 %v1031_v21 }
0x1039   :  { %1489 = vmatprep.subr.mxu0 %v1030_v23 }
0x103a   :  { %1490 = vmatpush3.msra.mxu0 %v1030_v23 }
0x103b   :  { %1491 = vmatprep.subr.mxu0 %v1029_v24 }
0x103c   :  { %1492 = vmatpush3.msra.mxu0 %v1029_v24  ;;  %v1038_v29 = vld [vmem:[#allocation3 + $0x28] sm:$0xff] }
0x103d   :  { %1494 = vmatmul.mubr.msk.f32.vlgmr.msra.gmra.mxu0 %vm194_vm2, %v1034_v25 }
0x103e   :  { %1496 = vmatprep.mubr.msk.f32.mxu0 %vm194_vm2, %v1035_v26 }
0x1041   :  { %1497 = vmatmul.mubr.msk.f32.gmra.mxu0 %vm194_vm2, %v1036_v27 }
0x1042   :  { %1499 = vmatprep.mubr.msk.f32.mxu0 %vm194_vm2, %v1037_v28 }
0x1045   :  { %1500 = vmatmul.mubr.msk.f32.gmra.mxu0 %vm194_vm2, %v1038_v29 }
0x10f5   :  { %v886_v31 = vpop.f32.mrf.mxu0 }
0x10f6   :  { %v890_v32 = vadd.f32 %v886_v31, %v171_v30 }
0x10f7   :  { %v1473_v33 = vpop.f32.mrf.mxu0 }
0x10f8   :  { %1562 = vtanh.f32 %v890_v32  ;;  %v1307_v35 = vmul.f32 -1.442695, %v890_v32 }
0x10fa   :  { %1564 = vpow2.f32 %v1307_v35 }
0x10fd   :  { %v1495_v60 = vpop.f32.mrf.mxu0 }
0x10fe   :  { %v1921_v5 = vadd.f32 %v1495_v60, %v1310_v63 }
0x10ff   :  { %v1138_v61 = vpop.f32.mrf.mxu0 }
0x1100   :  { %v1911_v4 = vadd.f32 %v1310_v63, %v1138_v61 }
0x1101   :  { %v1498_v62 = vpop.f32.mrf.mxu0 }
0x1102   :  { %v1914_v1 = vadd.f32 %v1498_v62, %v1310_v63 }
0x1103   :  { %v1148_v0 = vpop.f32.mrf.mxu0 }
0x1104   :  { %v1924_v6 = vadd.f32 %v1310_v63, %v1148_v0 }
0x1105   :  { %v1563_v34 = vpop.eup %1562  ;;  %v1501_v2 = vpop.f32.mrf.mxu0 }
0x1106   :  { %900 = vrot.lane.b32.xlu1 %v1563_v34, %s1612_s18  ;;  %v1917_v9 = vadd.f32 %v1501_v2, %v1310_v63 }
0x1107   :  { %v1565_v36 = vpop.eup %1564  ;;  %v1158_v12 = vpop.f32.mrf.mxu0 }
0x1108   :  { %v894_v37 = vadd.f32 1.0, %v1565_v36  ;;  %v1927_v7 = vadd.f32 %v1310_v63, %v1158_v12 }
0x110a   :  { %1566 = vrcp.f32 %v894_v37 }
0x1117   :  { %v1567_v38 = vpop.eup %1566 }
0x1118   :  { %v898_v41 = vmul.f32 %v1567_v38, %v805_v14 }
0x1178   :  { %v901_v39 = vpop.permute.xlu1 %900 }
0x1179   :  { %v903_v40 = vmul.f32 %v1567_v38, %v901_v39 }
0x117b   :  { %905 = vrot.lane.b32.xlu0 %v903_v40, %s1613_s21 }
0x11ed   :  { %v906_v42 = vpop.permute.xlu0 %905 }
0x11ee   :  { %v908_v20 = vadd.f32 %v906_v42, %v898_v41 }
0x11f0   :  { %1568 = vtanh.f32 %v908_v20 }
0x11fd   :  { %v1569_v43 = vpop.eup %1568 }
0x11fe   :  { %911 = vrot.lane.b32.xlu1 %v1569_v43, %s1612_s18 }
0x1270   :  { %v912_v44 = vpop.permute.xlu1 %911 }
0x1271   :  { %v914_v45 = vmul.f32 %v1567_v38, %v912_v44 }
0x1273   :  { %916 = vrot.lane.b32.xlu0 %v914_v45, %s1613_s21 }
0x12e5   :  { %v917_v46 = vpop.permute.xlu0 %916 }
0x12e6   :  { %919 = vst.msk [vmem:[#allocation3 + $0x30] sm:$0xff] %vm194_vm2, %v917_v46  ;;  %1483 = vmatmul.mubr.msk.f32.vlgmr.msra.gmra.mxu1 %vm194_vm2, %v917_v46 }
0x12ed   :  { %v1039_v47 = vld [vmem:[#allocation3 + $0x30] sm:$0xff] }
0x12ee   :  { %1502 = vmatprep.mubr.msk.f32.mxu0 %vm194_vm2, %v1039_v47 }
0x13a6   :  { %v989_v49 = vpop.f32.mrf.mxu1 }
0x13a7   :  { %v993_v50 = vadd.f32 %v989_v49, %v176_v48 }
0x13a8   :  { %v1484_v51 = vpop.f32.mrf.mxu1 }
0x13a9   :  { %1570 = vtanh.f32 %v993_v50  ;;  %v1309_v53 = vmul.f32 -1.442695, %v993_v50 }
0x13ab   :  { %1572 = vpow2.f32 %v1309_v53 }
0x13b6   :  { %v1571_v52 = vpop.eup %1570 }
0x13b7   :  { %1003 = vrot.lane.b32.xlu1 %v1571_v52, %s1612_s18 }
0x13b8   :  { %v1573_v54 = vpop.eup %1572 }
0x13b9   :  { %v997_v55 = vadd.f32 1.0, %v1573_v54 }
0x13bb   :  { %1574 = vrcp.f32 %v997_v55 }
0x13c8   :  { %v1575_v56 = vpop.eup %1574 }
0x13c9   :  { %v1001_v58 = vmul.f32 %v1575_v56, %v908_v20 }
0x1429   :  { %v1004_v57 = vpop.permute.xlu1 %1003 }
0x142a   :  { %v1006_v15 = vmul.f32 %v1575_v56, %v1004_v57 }
0x142c   :  { %1008 = vrot.lane.b32.xlu0 %v1006_v15, %s1613_s21 }
0x149e   :  { %v1009_v59 = vpop.permute.xlu0 %1008 }
0x149f   :  { %v1904_v17 = vadd.f32 %v1009_v59, %v1001_v58 }
0x14a1   :  { %1576 = vtanh.f32 %v1904_v17 }
0x14ae   :  { %v1577_v19 = vpop.eup %1576 }
0x14af   :  { %1014 = vrot.lane.b32.xlu1 %v1577_v19, %s1612_s18 }
0x14d3   :  { %1177 = vmax.xlane.f32.xlu1 %v1911_v4 }
0x14d7   :  { %1183 = vmax.xlane.f32.xlu1 %v1914_v1 }
0x14db   :  { %1187 = vmax.xlane.f32.xlu1 %v1917_v9 }
0x1521   :  { %v1015_v3 = vpop.permute.xlu1 %1014 }
0x1522   :  { %v1017_v11 = vmul.f32 %v1575_v56, %v1015_v3 }
0x1524   :  { %1019 = vrot.lane.b32.xlu0 %v1017_v11, %s1613_s21  ;;  %s1614_s21 = smov 96  }
0x1543   :  { %1179 = vmax.xlane.f32.xlu0 %v1921_v5 }
0x1547   :  { %1181 = vmax.xlane.f32.xlu0 %v1924_v6 }
0x154b   :  { %1185 = vmax.xlane.f32.xlu0 %v1927_v7 }
0x155c   :  { %v1936_v10 = vpop.xlane.xlu1 %1177 }
0x155d   :  { %v1193_v22 = vsub.f32 %v1911_v4, %v1936_v10 }
0x155f   :  { %v1201_v26 = vmul.f32 1.442695, %v1193_v22 }
0x1560   :  { %v1940_v16 = vpop.xlane.xlu1 %1183 }
0x1561   :  { %v1196_v23 = vsub.f32 %v1914_v1, %v1940_v16 }
0x1563   :  { %v1207_v29 = vmul.f32 1.442695, %v1196_v23 }
0x1564   :  { %v1950_v25 = vpop.xlane.xlu1 %1187 }
0x1565   :  { %v1198_v30 = vsub.f32 %v1917_v9, %v1950_v25 }
0x1567   :  { %v1211_v33 = vmul.f32 1.442695, %v1198_v30 }
0x1596   :  { %v1020_v14 = vpop.permute.xlu0 %1019 }
0x1597   :  { %1022 = vst.msk [vmem:[#allocation3 + $0x38] sm:$0xff] %vm194_vm2, %v1020_v14  ;;  %1023 = vst.msk [vmem:[%s2027_s9] sm:$0xff] %vm194_vm2, %v1020_v14 }
0x159e   :  { %v1040_v8 = vld [vmem:[#allocation3 + $0x38] sm:$0xff] }
0x159f   :  { %1503 = vmatmul.mubr.msk.f32.gmra.mxu0 %vm194_vm2, %v1040_v8 }
0x15cc   :  { %v1938_v13 = vpop.xlane.xlu0 %1179 }
0x15cd   :  { %v1194_v18 = vsub.f32 %v1921_v5, %v1938_v13 }
0x15cf   :  { %v1203_v24 = vmul.f32 1.442695, %v1194_v18 }
0x15d0   :  { %v1944_v21 = vpop.xlane.xlu0 %1181 }
0x15d1   :  { %v1195_v27 = vsub.f32 %v1924_v6, %v1944_v21  ;;  %1578 = vpow2.f32 %v1203_v24 }
0x15d2   :  { %1580 = vpow2.f32 %v1201_v26 }
0x15d3   :  { %v1205_v31 = vmul.f32 1.442695, %v1195_v27  ;;  %1582 = vpow2.f32 %v1207_v29 }
0x15d4   :  { %v1954_v28 = vpop.xlane.xlu0 %1185 }
0x15d5   :  { %v1197_v32 = vsub.f32 %v1927_v7, %v1954_v28  ;;  %1584 = vpow2.f32 %v1205_v31 }
0x15d6   :  { %1586 = vpow2.f32 %v1211_v33 }
0x15d7   :  { %v1209_v34 = vmul.f32 1.442695, %v1197_v32 }
0x15d9   :  { %1588 = vpow2.f32 %v1209_v34 }
0x15de   :  { %v1579_v39 = vpop.eup %1578 }
0x15df   :  { %v1581_v40 = vpop.eup %1580 }
0x15e0   :  { %v1583_v41 = vpop.eup %1582 }
0x15e2   :  { %v1585_v42 = vpop.eup %1584 }
0x15e3   :  { %v1587_v20 = vpop.eup %1586 }
0x15e6   :  { %v1589_v43 = vpop.eup %1588 }
0x165f   :  { %v1504_v35 = vpop.f32.mrf.mxu0 }
0x1660   :  { %v1960_v36 = vadd.f32 %v1504_v35, %v1310_v63 }
0x1661   :  { %v1168_v37 = vpop.f32.mrf.mxu0 }
0x1662   :  { %v1962_v38 = vadd.f32 %v1310_v63, %v1168_v37  ;;  %1191 = vmax.xlane.f32.xlu1 %v1960_v36 }
0x1664   :  { %1189 = vmax.xlane.f32.xlu0 %v1962_v38 }
0x1666   :  { %1219 = vadd.xlane.f32.xlu1 %v1579_v39 }
0x1668   :  { %1217 = vadd.xlane.f32.xlu0 %v1581_v40 }
0x166a   :  { %1223 = vadd.xlane.f32.xlu1 %v1583_v41 }
0x166c   :  { %1221 = vadd.xlane.f32.xlu0 %v1585_v42 }
0x166e   :  { %1227 = vadd.xlane.f32.xlu1 %v1587_v20 }
0x1670   :  { %1225 = vadd.xlane.f32.xlu0 %v1589_v43 }
0x16eb   :  { %v1966_v44 = vpop.xlane.xlu1 %1191 }
0x16ec   :  { %v1200_v45 = vsub.f32 %v1960_v36, %v1966_v44 }
0x16ed   :  { %v1970_v46 = vpop.xlane.xlu0 %1189 }
0x16ee   :  { %v1215_v47 = vmul.f32 1.442695, %v1200_v45  ;;  %v1199_v48 = vsub.f32 %v1962_v38, %v1970_v46 }
0x16ef   :  { %v1220_v49 = vpop.xlane.xlu1 %1219 }
0x16f0   :  { %1590 = vpow2.f32 %v1215_v47  ;;  %v1213_v50 = vmul.f32 1.442695, %v1199_v48 }
0x16f1   :  { %1592 = vlog2.f32 %v1220_v49  ;;  %v1218_v51 = vpop.xlane.xlu0 %1217 }
0x16f2   :  { %1594 = vpow2.f32 %v1213_v50 }
0x16f3   :  { %1596 = vlog2.f32 %v1218_v51  ;;  %v1224_v52 = vpop.xlane.xlu1 %1223 }
0x16f4   :  { %1598 = vlog2.f32 %v1224_v52 }
0x16f5   :  { %v1222_v53 = vpop.xlane.xlu0 %1221 }
0x16f6   :  { %1600 = vlog2.f32 %v1222_v53 }
0x16f7   :  { %v1228_v54 = vpop.xlane.xlu1 %1227 }
0x16f8   :  { %1602 = vlog2.f32 %v1228_v54 }
0x16f9   :  { %v1226_v55 = vpop.xlane.xlu0 %1225 }
0x16fa   :  { %1604 = vlog2.f32 %v1226_v55 }
0x16fd   :  { %v1591_v56 = vpop.eup %1590 }
0x16fe   :  { %v1593_v57 = vpop.eup %1592  ;;  %1231 = vadd.xlane.f32.xlu1 %v1591_v56 }
0x16ff   :  { %v1595_v15 = vpop.eup %1594  ;;  %v1236_v58 = vmul.f32 0.6931472, %v1593_v57 }
0x1700   :  { %v1597_v59 = vpop.eup %1596  ;;  %1229 = vadd.xlane.f32.xlu0 %v1595_v15 }
0x1701   :  { %v1599_v19 = vpop.eup %1598  ;;  %v1250_v60 = vadd.f32 %v1236_v58, %v1938_v13  ;;  %v1234_v61 = vmul.f32 0.6931472, %v1597_v59 }
0x1702   :  { %v1240_v62 = vmul.f32 0.6931472, %v1599_v19 }
0x1703   :  { %v1601_v63 = vpop.eup %1600  ;;  %v1258_v0 = vsub.f32 %v1921_v5, %v1250_v60  ;;  %v1249_v2 = vadd.f32 %v1234_v61, %v1936_v10 }
0x1704   :  { %v1252_v3 = vadd.f32 %v1240_v62, %v1940_v16  ;;  %v1238_v11 = vmul.f32 0.6931472, %v1601_v63 }
0x1705   :  { %v1603_v12 = vpop.eup %1602  ;;  %1266 = vst [vmem:[%s2028_s8 + $0x8] sm:$0xff] %v1258_v0  ;;  %v1257_v14 = vsub.f32 %v1911_v4, %v1249_v2 }
0x1706   :  { %v1260_v8 = vsub.f32 %v1914_v1, %v1252_v3  ;;  %v1251_v13 = vadd.f32 %v1238_v11, %v1944_v21  ;;  %v1244_v18 = vmul.f32 0.6931472, %v1603_v12 }
0x1707   :  { %v1605_v22 = vpop.eup %1604  ;;  %1265 = vst [vmem:[%s2028_s8] sm:$0xff] %v1257_v14 }
0x1708   :  { %1268 = vst [vmem:[%s2028_s8 + $0x18] sm:$0xff] %v1260_v8  ;;  %v1259_v5 = vsub.f32 %v1924_v6, %v1251_v13  ;;  %v1254_v10 = vadd.f32 %v1244_v18, %v1950_v25  ;;  %v1242_v16 = vmul.f32 0.6931472, %v1605_v22 }
0x170a   :  { %1267 = vst [vmem:[%s2028_s8 + $0x10] sm:$0xff] %v1259_v5  ;;  %v1262_v4 = vsub.f32 %v1917_v9, %v1254_v10  ;;  %v1253_v1 = vadd.f32 %v1242_v16, %v1954_v28 }
0x170c   :  { %1270 = vst [vmem:[%s2028_s8 + $0x28] sm:$0xff] %v1262_v4  ;;  %v1261_v21 = vsub.f32 %v1927_v7, %v1253_v1 }
0x170e   :  { %1269 = vst [vmem:[%s2028_s8 + $0x20] sm:$0xff] %v1261_v21 }
0x1716   :  { %1025 = vrot.lane.b32.xlu0 %v1904_v17, %s1614_s21 }
0x1787   :  { %v1232_v6 = vpop.xlane.xlu1 %1231 }
0x1788   :  { %1606 = vlog2.f32 %v1232_v6 }
0x1789   :  { %v1230_v23 = vpop.xlane.xlu0 %1229 }
0x178a   :  { %1608 = vlog2.f32 %v1230_v23 }
0x178d   :  { %v1026_v9 = vpop.permute.xlu0 %1025 }
0x178e   :  { %1028 = vst.msk [vmem:[%s2029_s10] sm:$0xff] %vm194_vm2, %v1026_v9 }
0x1795   :  { %v1607_v24 = vpop.eup %1606 }
0x1796   :  { %v1248_v25 = vmul.f32 0.6931472, %v1607_v24 }
0x1797   :  { %v1609_v7 = vpop.eup %1608 }
0x1798   :  { %v1256_v26 = vadd.f32 %v1248_v25, %v1966_v44  ;;  %v1246_v27 = vmul.f32 0.6931472, %v1609_v7 }
0x179a   :  { %v1264_v28 = vsub.f32 %v1960_v36, %v1256_v26  ;;  %v1255_v17 = vadd.f32 %v1246_v27, %v1970_v46 }
0x179c   :  { %1272 = vst [vmem:[%s2028_s8 + $0x38] sm:$0xff] %v1264_v28  ;;  %v1263_v29 = vsub.f32 %v1962_v38, %v1255_v17 }
0x179e   :  { %1271 = vst [vmem:[%s2028_s8 + $0x30] sm:$0xff] %v1263_v29 }

</bundles_post_ra>
